<compile_context>
chip_gen: v5e
topology: v5e:2x2
jax: 0.10.0
libtpu: 0.0.40
codegen_flags: <defaults>
</compile_context>

<pallas_src>
import functools

import jax
import jax.numpy as jnp
import numpy as np
from jax.experimental import pallas as pl
from jax.experimental.pallas import tpu as pltpu

EPS = 1e-5


def _basic_block_kernel(x_ref, g1_ref, b1_ref, bias1_ref,
                        g2_ref, b2_ref, bias2_ref,
                        w1_ref, w2_ref, fold_ref,
                        out_ref, pad_ref,
                        *, N, H, W, C, KH, p):
    """Whole BasicBlock forward on lane-dense fused (N*H, W*C) tiles.

    x_ref:      (N*H, W*C)                 input, lane-dense
    g*/b*/bias*:(1, W*C)                   per-channel params tiled over W
    w*_ref:     (KH, (W+2p)*C, W*C) bf16   block-banded conv weights (kw fused)
    fold_ref:   (W*C, W*C)                 channel-fold indicator (kron(1_W, I_C))
    out_ref:    (N*H, W*C)
    pad_ref:    (N, H+2p, (W+2p)*C)        zero-padded scratch (VMEM)
    """
    NH = N * H
    WC = W * C
    WPC = (W + 2 * p) * C
    inv_cnt = 1.0 / float(N * H * W)

    x = x_ref[...]                                     # (NH, WC) f32

    # ---- zero only the padding halo, once (interiors are rewritten per conv) ----
    pad_ref[:, :p, :] = jnp.zeros((N, p, WPC), jnp.float32)
    pad_ref[:, p + H:, :] = jnp.zeros((N, p, WPC), jnp.float32)
    pad_ref[:, :, :p * C] = jnp.zeros((N, H + 2 * p, p * C), jnp.float32)
    pad_ref[:, :, (p + W) * C:] = jnp.zeros((N, H + 2 * p, p * C), jnp.float32)

    fold = fold_ref[...]                               # (WC, WC) f32

    def bn_relu(h, gamma, beta):
        # Training-mode BatchNorm2d, single pass: sum and sum-of-squares
        # together; per-channel fold + broadcast via one tiny f32 matmul.
        s1 = jnp.sum(h, axis=0, keepdims=True)         # (1, WC)
        s2 = jnp.sum(h * h, axis=0, keepdims=True)     # (1, WC)
        mean = jnp.dot(s1, fold, preferred_element_type=jnp.float32) * inv_cnt
        msq = jnp.dot(s2, fold, preferred_element_type=jnp.float32) * inv_cnt
        var = msq - mean * mean                        # biased variance
        hn = (h - mean) * jax.lax.rsqrt(var + EPS)
        return jnp.maximum(hn * gamma + beta, 0.0)

    def conv(h, w_ref, bias):
        # Write interior of padded scratch (halo already zero).
        pad_ref[:, p:p + H, p * C:(p + W) * C] = h.reshape(N, H, WC)
        acc = jnp.zeros((NH, WC), jnp.float32)
        # KH matmuls; kw taps + channel contraction are fused into the
        # block-banded weight -> K = (W+2p)*C = 144, Nout = W*C = 128.
        for kh in range(KH):
            rows = pad_ref[:, kh:kh + H, :].reshape(NH, WPC)
            acc = acc + jnp.dot(rows.astype(jnp.bfloat16), w_ref[kh],
                                preferred_element_type=jnp.float32)
        return acc + bias

    h = bn_relu(x, g1_ref[...], b1_ref[...])           # batch_norm1 + relu
    h = conv(h, w1_ref, bias1_ref[...])                # conv1
    h = bn_relu(h, g2_ref[...], b2_ref[...])           # batch_norm2 + relu2
    h = conv(h, w2_ref, bias2_ref[...])                # conv2
    out_ref[...] = x + h                               # residual add (lane-dense vst)


def _expand_conv_weights(w_hwio, W, p):
    """(KH, KW, Cin, Cout) -> (KH, (W+2p)*Cin, W*Cout) block-banded matrices.

    For tap kh: M[(x+kw)*Cin + ci, x*Cout + co] = w[kh, kw, ci, co], so one
    matmul over a full padded fused row performs the kw and channel sums.
    """
    KH, KW, Cin, Cout = w_hwio.shape
    eye_w = jnp.eye(W, dtype=w_hwio.dtype)
    mats = []
    for kh in range(KH):
        m = jnp.zeros(((W + 2 * p) * Cin, W * Cout), w_hwio.dtype)
        for kw in range(KW):
            blk = jnp.kron(eye_w, w_hwio[kh, kw])                    # (W*Cin, W*Cout)
            m = m + jnp.pad(blk, ((kw * Cin, (2 * p - kw) * Cin), (0, 0)))
        mats.append(m)
    return jnp.stack(mats, axis=0)


@jax.jit
def basic_block_pallas_nhwc(x_nhwc, params):
    """BasicBlock.forward on an NHWC tensor (no layout transposes)."""
    x = x_nhwc.astype(jnp.float32)
    N, H, W, C = x.shape
    KH = params["w1"].shape[0]
    assert KH % 2 == 1
    p = KH // 2                       # stride=1, 'same' padding (residual-add compatible)
    NH, WC, WPC = N * H, W * C, (W + 2 * p) * C

    x2d = x.reshape(NH, WC)           # lane-dense view (free row-major reshape)

    def tile_c(v):                    # per-channel (1, C) -> fused (1, W*C)
        return jnp.tile(v.reshape(1, C).astype(jnp.float32), (1, W))

    w1k = _expand_conv_weights(params["w1"].astype(jnp.float32), W, p).astype(jnp.bfloat16)
    w2k = _expand_conv_weights(params["w2"].astype(jnp.float32), W, p).astype(jnp.bfloat16)
    fold = jnp.kron(jnp.ones((W, W), jnp.float32), jnp.eye(C, dtype=jnp.float32))

    kernel = functools.partial(_basic_block_kernel,
                               N=N, H=H, W=W, C=C, KH=KH, p=p)
    vmem = pl.BlockSpec(memory_space=pltpu.MemorySpace.VMEM)

    out2d = pl.pallas_call(
        kernel,
        out_shape=jax.ShapeDtypeStruct((NH, WC), jnp.float32),
        in_specs=[vmem] * 10,
        out_specs=vmem,
        scratch_shapes=[pltpu.VMEM((N, H + 2 * p, WPC), jnp.float32)],
    )(x2d,
      tile_c(params["g1"]), tile_c(params["b1"]), tile_c(params["bias1"]),
      tile_c(params["g2"]), tile_c(params["b2"]), tile_c(params["bias2"]),
      w1k, w2k, fold)
    return out2d.reshape(N, H, W, C)


def basic_block_pallas(x_nchw, params):
    """Convenience wrapper for PyTorch-layout (NCHW) callers: boundary transposes only."""
    x = jnp.transpose(x_nchw, (0, 2, 3, 1))
    return jnp.transpose(basic_block_pallas_nhwc(x, params), (0, 3, 1, 2))


def reference_nhwc(x_nhwc, params):
    """Pure-JAX NHWC reference mirroring the PyTorch forward exactly (f32)."""
    KH = params["w1"].shape[0]
    p = KH // 2

    def bn_relu(h, gamma, beta):
        mean = h.mean(axis=(0, 1, 2), keepdims=True)
        var = ((h - mean) ** 2).mean(axis=(0, 1, 2), keepdims=True)
        hn = (h - mean) / jnp.sqrt(var + EPS)
        hn = hn * gamma.reshape(1, 1, 1, -1) + beta.reshape(1, 1, 1, -1)
        return jnp.maximum(hn, 0.0)

    def conv(h, w_hwio, bias):
        y = jax.lax.conv_general_dilated(
            h, w_hwio, window_strides=(1, 1), padding=[(p, p), (p, p)],
            dimension_numbers=("NHWC", "HWIO", "NHWC"))
        return y + bias.reshape(1, 1, 1, -1)

    x = x_nhwc.astype(jnp.float32)
    h = bn_relu(x, params["g1"], params["b1"])
    h = conv(h, params["w1"], params["bias1"])
    h = bn_relu(h, params["g2"], params["b2"])
    h = conv(h, params["w2"], params["bias2"])
    return x + h


def init_params(key, channels, kernel_size):
    ks = jax.random.split(key, 8)
    C, K = channels, kernel_size
    return {
        "g1": 1.0 + 0.1 * jax.random.normal(ks[0], (1, C), jnp.float32),
        "b1": 0.1 * jax.random.normal(ks[1], (1, C), jnp.float32),
        "w1": 0.1 * jax.random.normal(ks[2], (K, K, C, C), jnp.float32),
        "bias1": 0.1 * jax.random.normal(ks[3], (1, C), jnp.float32),
        "g2": 1.0 + 0.1 * jax.random.normal(ks[4], (1, C), jnp.float32),
        "b2": 0.1 * jax.random.normal(ks[5], (1, C), jnp.float32),
        "w2": 0.1 * jax.random.normal(ks[6], (K, K, C, C), jnp.float32),
        "bias2": 0.1 * jax.random.normal(ks[7], (1, C), jnp.float32),
    }


if __name__ == "__main__":
    # BasicBlock(channels=8, kernel_size=3, stride=1, padding=1), NHWC end-to-end.
    N, H, W, C = 2, 16, 16, 8
    kernel_size = 3

    key = jax.random.PRNGKey(0)
    k_x, k_p = jax.random.split(key)
    x = jax.random.normal(k_x, (N, H, W, C), jnp.float32)
    params = init_params(k_p, C, kernel_size)

    out = jax.block_until_ready(basic_block_pallas_nhwc(x, params))
    ref = jax.block_until_ready(reference_nhwc(x, params))

    assert out.shape == (N, H, W, C)
    # bf16 MXU operands with f32 accumulation -> slightly looser tolerance than
    # a pure-f32 compare; still far below any real indexing/semantics bug.
    np.testing.assert_allclose(np.asarray(out), np.asarray(ref),
                               rtol=2e-2, atol=2e-2)
    print("KERNEL_OK")
</pallas_src>

<mosaic_0001>
module attributes {stable_mosaic.version = 11 : i64} {
  func.func @_basic_block_kernel(%arg0: memref<32x128xf32, #tpu.memory_space<vmem>>, %arg1: memref<1x128xf32, #tpu.memory_space<vmem>>, %arg2: memref<1x128xf32, #tpu.memory_space<vmem>>, %arg3: memref<1x128xf32, #tpu.memory_space<vmem>>, %arg4: memref<1x128xf32, #tpu.memory_space<vmem>>, %arg5: memref<1x128xf32, #tpu.memory_space<vmem>>, %arg6: memref<1x128xf32, #tpu.memory_space<vmem>>, %arg7: memref<3x144x128xbf16, #tpu.memory_space<vmem>>, %arg8: memref<3x144x128xbf16, #tpu.memory_space<vmem>>, %arg9: memref<128x128xf32, #tpu.memory_space<vmem>>, %arg10: memref<32x128xf32, #tpu.memory_space<vmem>>, %arg11: memref<2x18x144xf32, #tpu.memory_space<vmem>>) attributes {dimension_semantics = [], scalar_prefetch = 0 : i64, scratch_operands = 1 : i64, tpu.core_type = #tpu.core_type<tc>} {
    %c0 = arith.constant 0 : index
    %c0_0 = arith.constant 0 : index
    %0 = vector.load %arg0[%c0, %c0_0] : memref<32x128xf32, #tpu.memory_space<vmem>>, vector<32x128xf32>
    %cst = arith.constant 0.000000e+00 : f32
    %1 = vector.broadcast %cst : f32 to vector<2x1x144xf32>
    %c0_1 = arith.constant 0 : index
    %c0_2 = arith.constant 0 : index
    %c0_3 = arith.constant 0 : index
    %2 = vector.load %arg11[%c0_1, %c0_2, %c0_3] : memref<2x18x144xf32, #tpu.memory_space<vmem>>, vector<2x1x144xf32>
    tpu.vector_store %arg11[%c0_1, %c0_2, %c0_3], %1 {strides = array<i32>} : memref<2x18x144xf32, #tpu.memory_space<vmem>>, vector<2x1x144xf32>,
    %cst_4 = arith.constant 0.000000e+00 : f32
    %3 = vector.broadcast %cst_4 : f32 to vector<2x1x144xf32>
    %c0_5 = arith.constant 0 : index
    %c17 = arith.constant 17 : index
    %c0_6 = arith.constant 0 : index
    %4 = vector.load %arg11[%c0_5, %c17, %c0_6] : memref<2x18x144xf32, #tpu.memory_space<vmem>>, vector<2x1x144xf32>
    tpu.vector_store %arg11[%c0_5, %c17, %c0_6], %3 {strides = array<i32>} : memref<2x18x144xf32, #tpu.memory_space<vmem>>, vector<2x1x144xf32>,
    %cst_7 = arith.constant 0.000000e+00 : f32
    %5 = vector.broadcast %cst_7 : f32 to vector<2x18x8xf32>
    %c0_8 = arith.constant 0 : index
    %c0_9 = arith.constant 0 : index
    %c0_10 = arith.constant 0 : index
    %6 = vector.load %arg11[%c0_8, %c0_9, %c0_10] : memref<2x18x144xf32, #tpu.memory_space<vmem>>, vector<2x18x8xf32>
    tpu.vector_store %arg11[%c0_8, %c0_9, %c0_10], %5 {strides = array<i32>} : memref<2x18x144xf32, #tpu.memory_space<vmem>>, vector<2x18x8xf32>,
    %cst_11 = arith.constant 0.000000e+00 : f32
    %7 = vector.broadcast %cst_11 : f32 to vector<2x18x8xf32>
    %c0_12 = arith.constant 0 : index
    %c0_13 = arith.constant 0 : index
    %c136 = arith.constant 136 : index
    %8 = vector.load %arg11[%c0_12, %c0_13, %c136] : memref<2x18x144xf32, #tpu.memory_space<vmem>>, vector<2x18x8xf32>
    tpu.vector_store %arg11[%c0_12, %c0_13, %c136], %7 {strides = array<i32>} : memref<2x18x144xf32, #tpu.memory_space<vmem>>, vector<2x18x8xf32>,
    %c0_14 = arith.constant 0 : index
    %c0_15 = arith.constant 0 : index
    %9 = vector.load %arg9[%c0_14, %c0_15] : memref<128x128xf32, #tpu.memory_space<vmem>>, vector<128x128xf32>
    %c0_16 = arith.constant 0 : index
    %c0_17 = arith.constant 0 : index
    %10 = vector.load %arg1[%c0_16, %c0_17] : memref<1x128xf32, #tpu.memory_space<vmem>>, vector<1x128xf32>
    %c0_18 = arith.constant 0 : index
    %c0_19 = arith.constant 0 : index
    %11 = vector.load %arg2[%c0_18, %c0_19] : memref<1x128xf32, #tpu.memory_space<vmem>>, vector<1x128xf32>
    %cst_20 = arith.constant dense<0.000000e+00> : vector<128xf32>
    %12 = vector.multi_reduction <add>, %0, %cst_20 [0] : vector<32x128xf32> to vector<128xf32>
    %13 = vector.shape_cast %12 : vector<128xf32> to vector<1x128xf32>
    %14 = arith.mulf %0, %0 : vector<32x128xf32>
    %cst_21 = arith.constant dense<0.000000e+00> : vector<128xf32>
    %15 = vector.multi_reduction <add>, %14, %cst_21 [0] : vector<32x128xf32> to vector<128xf32>
    %16 = vector.shape_cast %15 : vector<128xf32> to vector<1x128xf32>
    %cst_22 = arith.constant dense<0.000000e+00> : vector<1x128xf32>
    %17 = tpu.matmul %13, %9, %cst_22 {dimension_numbers = #tpu.dot_dimension_numbers<[1], [0], [0], [1], [0, 0, 1, 1], [], []>} : vector<1x128xf32>, vector<128x128xf32>, vector<1x128xf32> -> vector<1x128xf32>
    %cst_23 = arith.constant 0.001953125 : f32
    %18 = vector.broadcast %cst_23 : f32 to vector<1x128xf32>
    %19 = arith.mulf %17, %18 : vector<1x128xf32>
    %cst_24 = arith.constant dense<0.000000e+00> : vector<1x128xf32>
    %20 = tpu.matmul %16, %9, %cst_24 {dimension_numbers = #tpu.dot_dimension_numbers<[1], [0], [0], [1], [0, 0, 1, 1], [], []>} : vector<1x128xf32>, vector<128x128xf32>, vector<1x128xf32> -> vector<1x128xf32>
    %cst_25 = arith.constant 0.001953125 : f32
    %21 = vector.broadcast %cst_25 : f32 to vector<1x128xf32>
    %22 = arith.mulf %20, %21 : vector<1x128xf32>
    %23 = arith.mulf %19, %19 : vector<1x128xf32>
    %24 = arith.subf %22, %23 : vector<1x128xf32>
    %25 = vector.broadcast %19 : vector<1x128xf32> to vector<32x128xf32>
    %26 = arith.subf %0, %25 : vector<32x128xf32>
    %cst_26 = arith.constant 9.99999974E-6 : f32
    %27 = vector.broadcast %cst_26 : f32 to vector<1x128xf32>
    %28 = arith.addf %24, %27 : vector<1x128xf32>
    %29 = math.rsqrt %28 : vector<1x128xf32>
    %30 = vector.broadcast %29 : vector<1x128xf32> to vector<32x128xf32>
    %31 = arith.mulf %26, %30 : vector<32x128xf32>
    %32 = vector.broadcast %10 : vector<1x128xf32> to vector<32x128xf32>
    %33 = arith.mulf %31, %32 : vector<32x128xf32>
    %34 = vector.broadcast %11 : vector<1x128xf32> to vector<32x128xf32>
    %35 = arith.addf %33, %34 : vector<32x128xf32>
    %cst_27 = arith.constant 0.000000e+00 : f32
    %36 = vector.broadcast %cst_27 : f32 to vector<32x128xf32>
    %37 = arith.maximumf %35, %36 : vector<32x128xf32>
    %c0_28 = arith.constant 0 : index
    %c0_29 = arith.constant 0 : index
    %38 = vector.load %arg3[%c0_28, %c0_29] : memref<1x128xf32, #tpu.memory_space<vmem>>, vector<1x128xf32>
    %39 = vector.shape_cast %37 : vector<32x128xf32> to vector<2x16x128xf32>
    %c0_30 = arith.constant 0 : index
    %c1 = arith.constant 1 : index
    %c8 = arith.constant 8 : index
    %40 = vector.load %arg11[%c0_30, %c1, %c8] : memref<2x18x144xf32, #tpu.memory_space<vmem>>, vector<2x16x128xf32>
    tpu.vector_store %arg11[%c0_30, %c1, %c8], %39 {strides = array<i32>} : memref<2x18x144xf32, #tpu.memory_space<vmem>>, vector<2x16x128xf32>,
    %cst_31 = arith.constant 0.000000e+00 : f32
    %41 = vector.broadcast %cst_31 : f32 to vector<32x128xf32>
    %c0_32 = arith.constant 0 : index
    %c0_33 = arith.constant 0 : index
    %c0_34 = arith.constant 0 : index
    %42 = vector.load %arg11[%c0_32, %c0_33, %c0_34] : memref<2x18x144xf32, #tpu.memory_space<vmem>>, vector<2x16x144xf32>
    %43 = vector.shape_cast %42 : vector<2x16x144xf32> to vector<32x144xf32>
    %44 = arith.truncf %43 : vector<32x144xf32> to vector<32x144xbf16>
    %c0_35 = arith.constant 0 : index
    %c0_36 = arith.constant 0 : index
    %c0_37 = arith.constant 0 : index
    %45 = vector.load %arg7[%c0_35, %c0_36, %c0_37] : memref<3x144x128xbf16, #tpu.memory_space<vmem>>, vector<1x144x128xbf16>
    %46 = vector.shape_cast %45 : vector<1x144x128xbf16> to vector<144x128xbf16>
    %cst_38 = arith.constant dense<0.000000e+00> : vector<32x128xf32>
    %47 = tpu.matmul %44, %46, %cst_38 {dimension_numbers = #tpu.dot_dimension_numbers<[1], [0], [0], [1], [0, 0, 1, 1], [], []>} : vector<32x144xbf16>, vector<144x128xbf16>, vector<32x128xf32> -> vector<32x128xf32>
    %48 = arith.addf %41, %47 : vector<32x128xf32>
    %c0_39 = arith.constant 0 : index
    %c1_40 = arith.constant 1 : index
    %c0_41 = arith.constant 0 : index
    %49 = vector.load %arg11[%c0_39, %c1_40, %c0_41] : memref<2x18x144xf32, #tpu.memory_space<vmem>>, vector<2x16x144xf32>
    %50 = vector.shape_cast %49 : vector<2x16x144xf32> to vector<32x144xf32>
    %51 = arith.truncf %50 : vector<32x144xf32> to vector<32x144xbf16>
    %c1_42 = arith.constant 1 : index
    %c0_43 = arith.constant 0 : index
    %c0_44 = arith.constant 0 : index
    %52 = vector.load %arg7[%c1_42, %c0_43, %c0_44] : memref<3x144x128xbf16, #tpu.memory_space<vmem>>, vector<1x144x128xbf16>
    %53 = vector.shape_cast %52 : vector<1x144x128xbf16> to vector<144x128xbf16>
    %cst_45 = arith.constant dense<0.000000e+00> : vector<32x128xf32>
    %54 = tpu.matmul %51, %53, %cst_45 {dimension_numbers = #tpu.dot_dimension_numbers<[1], [0], [0], [1], [0, 0, 1, 1], [], []>} : vector<32x144xbf16>, vector<144x128xbf16>, vector<32x128xf32> -> vector<32x128xf32>
    %55 = arith.addf %48, %54 : vector<32x128xf32>
    %c0_46 = arith.constant 0 : index
    %c2 = arith.constant 2 : index
    %c0_47 = arith.constant 0 : index
    %56 = vector.load %arg11[%c0_46, %c2, %c0_47] : memref<2x18x144xf32, #tpu.memory_space<vmem>>, vector<2x16x144xf32>
    %57 = vector.shape_cast %56 : vector<2x16x144xf32> to vector<32x144xf32>
    %58 = arith.truncf %57 : vector<32x144xf32> to vector<32x144xbf16>
    %c2_48 = arith.constant 2 : index
    %c0_49 = arith.constant 0 : index
    %c0_50 = arith.constant 0 : index
    %59 = vector.load %arg7[%c2_48, %c0_49, %c0_50] : memref<3x144x128xbf16, #tpu.memory_space<vmem>>, vector<1x144x128xbf16>
    %60 = vector.shape_cast %59 : vector<1x144x128xbf16> to vector<144x128xbf16>
    %cst_51 = arith.constant dense<0.000000e+00> : vector<32x128xf32>
    %61 = tpu.matmul %58, %60, %cst_51 {dimension_numbers = #tpu.dot_dimension_numbers<[1], [0], [0], [1], [0, 0, 1, 1], [], []>} : vector<32x144xbf16>, vector<144x128xbf16>, vector<32x128xf32> -> vector<32x128xf32>
    %62 = arith.addf %55, %61 : vector<32x128xf32>
    %63 = vector.broadcast %38 : vector<1x128xf32> to vector<32x128xf32>
    %64 = arith.addf %62, %63 : vector<32x128xf32>
    %c0_52 = arith.constant 0 : index
    %c0_53 = arith.constant 0 : index
    %65 = vector.load %arg4[%c0_52, %c0_53] : memref<1x128xf32, #tpu.memory_space<vmem>>, vector<1x128xf32>
    %c0_54 = arith.constant 0 : index
    %c0_55 = arith.constant 0 : index
    %66 = vector.load %arg5[%c0_54, %c0_55] : memref<1x128xf32, #tpu.memory_space<vmem>>, vector<1x128xf32>
    %cst_56 = arith.constant dense<0.000000e+00> : vector<128xf32>
    %67 = vector.multi_reduction <add>, %64, %cst_56 [0] : vector<32x128xf32> to vector<128xf32>
    %68 = vector.shape_cast %67 : vector<128xf32> to vector<1x128xf32>
    %69 = arith.mulf %64, %64 : vector<32x128xf32>
    %cst_57 = arith.constant dense<0.000000e+00> : vector<128xf32>
    %70 = vector.multi_reduction <add>, %69, %cst_57 [0] : vector<32x128xf32> to vector<128xf32>
    %71 = vector.shape_cast %70 : vector<128xf32> to vector<1x128xf32>
    %cst_58 = arith.constant dense<0.000000e+00> : vector<1x128xf32>
    %72 = tpu.matmul %68, %9, %cst_58 {dimension_numbers = #tpu.dot_dimension_numbers<[1], [0], [0], [1], [0, 0, 1, 1], [], []>} : vector<1x128xf32>, vector<128x128xf32>, vector<1x128xf32> -> vector<1x128xf32>
    %cst_59 = arith.constant 0.001953125 : f32
    %73 = vector.broadcast %cst_59 : f32 to vector<1x128xf32>
    %74 = arith.mulf %72, %73 : vector<1x128xf32>
    %cst_60 = arith.constant dense<0.000000e+00> : vector<1x128xf32>
    %75 = tpu.matmul %71, %9, %cst_60 {dimension_numbers = #tpu.dot_dimension_numbers<[1], [0], [0], [1], [0, 0, 1, 1], [], []>} : vector<1x128xf32>, vector<128x128xf32>, vector<1x128xf32> -> vector<1x128xf32>
    %cst_61 = arith.constant 0.001953125 : f32
    %76 = vector.broadcast %cst_61 : f32 to vector<1x128xf32>
    %77 = arith.mulf %75, %76 : vector<1x128xf32>
    %78 = arith.mulf %74, %74 : vector<1x128xf32>
    %79 = arith.subf %77, %78 : vector<1x128xf32>
    %80 = vector.broadcast %74 : vector<1x128xf32> to vector<32x128xf32>
    %81 = arith.subf %64, %80 : vector<32x128xf32>
    %cst_62 = arith.constant 9.99999974E-6 : f32
    %82 = vector.broadcast %cst_62 : f32 to vector<1x128xf32>
    %83 = arith.addf %79, %82 : vector<1x128xf32>
    %84 = math.rsqrt %83 : vector<1x128xf32>
    %85 = vector.broadcast %84 : vector<1x128xf32> to vector<32x128xf32>
    %86 = arith.mulf %81, %85 : vector<32x128xf32>
    %87 = vector.broadcast %65 : vector<1x128xf32> to vector<32x128xf32>
    %88 = arith.mulf %86, %87 : vector<32x128xf32>
    %89 = vector.broadcast %66 : vector<1x128xf32> to vector<32x128xf32>
    %90 = arith.addf %88, %89 : vector<32x128xf32>
    %cst_63 = arith.constant 0.000000e+00 : f32
    %91 = vector.broadcast %cst_63 : f32 to vector<32x128xf32>
    %92 = arith.maximumf %90, %91 : vector<32x128xf32>
    %c0_64 = arith.constant 0 : index
    %c0_65 = arith.constant 0 : index
    %93 = vector.load %arg6[%c0_64, %c0_65] : memref<1x128xf32, #tpu.memory_space<vmem>>, vector<1x128xf32>
    %94 = vector.shape_cast %92 : vector<32x128xf32> to vector<2x16x128xf32>
    %c0_66 = arith.constant 0 : index
    %c1_67 = arith.constant 1 : index
    %c8_68 = arith.constant 8 : index
    %95 = vector.load %arg11[%c0_66, %c1_67, %c8_68] : memref<2x18x144xf32, #tpu.memory_space<vmem>>, vector<2x16x128xf32>
    tpu.vector_store %arg11[%c0_66, %c1_67, %c8_68], %94 {strides = array<i32>} : memref<2x18x144xf32, #tpu.memory_space<vmem>>, vector<2x16x128xf32>,
    %cst_69 = arith.constant 0.000000e+00 : f32
    %96 = vector.broadcast %cst_69 : f32 to vector<32x128xf32>
    %c0_70 = arith.constant 0 : index
    %c0_71 = arith.constant 0 : index
    %c0_72 = arith.constant 0 : index
    %97 = vector.load %arg11[%c0_70, %c0_71, %c0_72] : memref<2x18x144xf32, #tpu.memory_space<vmem>>, vector<2x16x144xf32>
    %98 = vector.shape_cast %97 : vector<2x16x144xf32> to vector<32x144xf32>
    %99 = arith.truncf %98 : vector<32x144xf32> to vector<32x144xbf16>
    %c0_73 = arith.constant 0 : index
    %c0_74 = arith.constant 0 : index
    %c0_75 = arith.constant 0 : index
    %100 = vector.load %arg8[%c0_73, %c0_74, %c0_75] : memref<3x144x128xbf16, #tpu.memory_space<vmem>>, vector<1x144x128xbf16>
    %101 = vector.shape_cast %100 : vector<1x144x128xbf16> to vector<144x128xbf16>
    %cst_76 = arith.constant dense<0.000000e+00> : vector<32x128xf32>
    %102 = tpu.matmul %99, %101, %cst_76 {dimension_numbers = #tpu.dot_dimension_numbers<[1], [0], [0], [1], [0, 0, 1, 1], [], []>} : vector<32x144xbf16>, vector<144x128xbf16>, vector<32x128xf32> -> vector<32x128xf32>
    %103 = arith.addf %96, %102 : vector<32x128xf32>
    %c0_77 = arith.constant 0 : index
    %c1_78 = arith.constant 1 : index
    %c0_79 = arith.constant 0 : index
    %104 = vector.load %arg11[%c0_77, %c1_78, %c0_79] : memref<2x18x144xf32, #tpu.memory_space<vmem>>, vector<2x16x144xf32>
    %105 = vector.shape_cast %104 : vector<2x16x144xf32> to vector<32x144xf32>
    %106 = arith.truncf %105 : vector<32x144xf32> to vector<32x144xbf16>
    %c1_80 = arith.constant 1 : index
    %c0_81 = arith.constant 0 : index
    %c0_82 = arith.constant 0 : index
    %107 = vector.load %arg8[%c1_80, %c0_81, %c0_82] : memref<3x144x128xbf16, #tpu.memory_space<vmem>>, vector<1x144x128xbf16>
    %108 = vector.shape_cast %107 : vector<1x144x128xbf16> to vector<144x128xbf16>
    %cst_83 = arith.constant dense<0.000000e+00> : vector<32x128xf32>
    %109 = tpu.matmul %106, %108, %cst_83 {dimension_numbers = #tpu.dot_dimension_numbers<[1], [0], [0], [1], [0, 0, 1, 1], [], []>} : vector<32x144xbf16>, vector<144x128xbf16>, vector<32x128xf32> -> vector<32x128xf32>
    %110 = arith.addf %103, %109 : vector<32x128xf32>
    %c0_84 = arith.constant 0 : index
    %c2_85 = arith.constant 2 : index
    %c0_86 = arith.constant 0 : index
    %111 = vector.load %arg11[%c0_84, %c2_85, %c0_86] : memref<2x18x144xf32, #tpu.memory_space<vmem>>, vector<2x16x144xf32>
    %112 = vector.shape_cast %111 : vector<2x16x144xf32> to vector<32x144xf32>
    %113 = arith.truncf %112 : vector<32x144xf32> to vector<32x144xbf16>
    %c2_87 = arith.constant 2 : index
    %c0_88 = arith.constant 0 : index
    %c0_89 = arith.constant 0 : index
    %114 = vector.load %arg8[%c2_87, %c0_88, %c0_89] : memref<3x144x128xbf16, #tpu.memory_space<vmem>>, vector<1x144x128xbf16>
    %115 = vector.shape_cast %114 : vector<1x144x128xbf16> to vector<144x128xbf16>
    %cst_90 = arith.constant dense<0.000000e+00> : vector<32x128xf32>
    %116 = tpu.matmul %113, %115, %cst_90 {dimension_numbers = #tpu.dot_dimension_numbers<[1], [0], [0], [1], [0, 0, 1, 1], [], []>} : vector<32x144xbf16>, vector<144x128xbf16>, vector<32x128xf32> -> vector<32x128xf32>
    %117 = arith.addf %110, %116 : vector<32x128xf32>
    %118 = vector.broadcast %93 : vector<1x128xf32> to vector<32x128xf32>
    %119 = arith.addf %117, %118 : vector<32x128xf32>
    %120 = arith.addf %0, %119 : vector<32x128xf32>
    %c0_91 = arith.constant 0 : index
    %c0_92 = arith.constant 0 : index
    %121 = vector.load %arg10[%c0_91, %c0_92] : memref<32x128xf32, #tpu.memory_space<vmem>>, vector<32x128xf32>
    tpu.vector_store %arg10[%c0_91, %c0_92], %120 {strides = array<i32>} : memref<32x128xf32, #tpu.memory_space<vmem>>, vector<32x128xf32>,
    return
  }
}

</mosaic_0001>

<bundles_post_ra>
// kernel: basic_block_pallas_nhwc.1
= control target key start
LH: loop header
LB: loop body
LE: loop exit
PB: predicated region body
PF: predicated region fallthrough
CT: control target
= control target key end

     0   :  { %vm55_vm0 = vcmask 64512   ;;  %v1720_v51 = vmov 0.0   ;;  %vm63_vm1 = vcmask 130112   ;;  %vm199_vm5 = vcmask 1040384   ;;  %s2306_s9 = inlined_call_operand.vmem [shape: f32[128,128], index: 9, kind: input, shape index: {}]   ;;  %s2307_s0 = inlined_call_operand.vmem [shape: f32[32,128], index: 0, kind: input, shape index: {}]   ;;  %s2308_s1 = inlined_call_operand.vmem [shape: f32[1,128], index: 1, kind: input, shape index: {}]   ;;  %s2309_s2 = inlined_call_operand.vmem [shape: f32[1,128], index: 2, kind: input, shape index: {}]   ;;  %s2310_s7 = inlined_call_operand.vmem [shape: bf16[3,144,128], index: 7, kind: input, shape index: {}]   ;;  %s2311_s3 = inlined_call_operand.vmem [shape: f32[1,128], index: 3, kind: input, shape index: {}]   ;;  %s2312_s4 = inlined_call_operand.vmem [shape: f32[1,128], index: 4, kind: input, shape index: {}]   ;;  %s2313_s5 = inlined_call_operand.vmem [shape: f32[1,128], index: 5, kind: input, shape index: {}]   ;;  %s2314_s8 = inlined_call_operand.vmem [shape: bf16[3,144,128], index: 8, kind: input, shape index: {}]   ;;  %s2315_s6 = inlined_call_operand.vmem [shape: f32[1,128], index: 6, kind: input, shape index: {}]   ;;  %s2316_s10 = inlined_call_operand.vmem [shape: f32[32,128], index: 10, kind: output, shape index: {}]  }
   0x1   :  { %v1780_v0 = vld [vmem:[%s2306_s9 + $0x78] sm:$0xff]  ;;  %v1785_v1 = vld [vmem:[%s2306_s9 + $0x70] sm:$0xff]  ;;  %v1792_v2 = vld [vmem:[%s2306_s9 + $0x68] sm:$0xff]  ;;  %61 = vst.msk [vmem:[#allocation2 + $0x40] sm:$0xff] %vm55_vm0, %v1720_v51  ;;  %vm58_vm6 = vcmask 58368   ;;  %vm66_vm8 = vcmask 123968  }
   0x2   :  { %111 = vmatpush.msra.mxu0 %v1780_v0  ;;  %132 = vmatpush.msra.mxu1 %v1780_v0  ;;  %v1799_v3 = vld [vmem:[%s2306_s9 + $0x60] sm:$0xff]  ;;  %v1811_v5 = vld [vmem:[%s2307_s0 + $0x8] sm:$0xff]  ;;  %v1816_v6 = vld [vmem:[%s2306_s9 + $0x58] sm:$0xff]  ;;  %69 = vst.msk [vmem:[#allocation2 + $0x48] sm:$0xff] %vm63_vm1, %v1720_v51  ;;  %vm228_vm9 = vcmask 1047616   ;;  %vm231_vm10 = vcmask 1040448  }
   0x3   :  { %v1806_v4 = vld [vmem:[%s2307_s0] sm:$0xff]  ;;  %v1821_v7 = vld [vmem:[%s2307_s0 + $0x10] sm:$0xff]  ;;  %v1826_v8 = vld [vmem:[%s2307_s0 + $0x18] sm:$0xff]  ;;  %v99_v11 = vmul.f32 %v1811_v5, %v1811_v5  ;;  %57 = vst.msk [vmem:[#allocation2 + $0x10] sm:$0xff] %vm55_vm0, %v1720_v51  ;;  %vm233_vm11 = vcmask 57344   ;;  %vm224_vm12 = vcmask 1047617  }
   0x4   :  { %112 = vmatpush.msra.mxu0 %v1785_v1  ;;  %133 = vmatpush.msra.mxu1 %v1785_v1  ;;  %v89_v9 = vadd.f32 %v1811_v5, %v1806_v4  ;;  %v98_v10 = vmul.f32 %v1806_v4, %v1806_v4  ;;  %v100_v12 = vmul.f32 %v1821_v7, %v1821_v7  ;;  %v1841_v13 = vld [vmem:[%s2306_s9 + $0x50] sm:$0xff]  ;;  %v1851_v17 = vld [vmem:[%s2306_s9 + $0x48] sm:$0xff]  ;;  %v1859_v20 = vld [vmem:[%s2306_s9 + $0x40] sm:$0xff]  ;;  %vm226_vm13 = vcmask 64513  }
   0x5   :  { %v101_v15 = vmul.f32 %v1826_v8, %v1826_v8  ;;  %v1866_v23 = vld [vmem:[%s2306_s9 + $0x38] sm:$0xff]  ;;  %v1873_v26 = vld [vmem:[%s2306_s9 + $0x30] sm:$0xff]  ;;  %v1880_v29 = vld [vmem:[%s2306_s9 + $0x28] sm:$0xff]  ;;  %65 = vst.msk [vmem:[#allocation2 + $0x18] sm:$0xff] %vm63_vm1, %v1720_v51  ;;  %vm291_vm14 = vcmask 1046528   ;;  %vm397_vm15 = vcmask 130048  }
   0x6   :  { %113 = vmatpush.msra.mxu0 %v1792_v2  ;;  %134 = vmatpush.msra.mxu1 %v1792_v2  ;;  %v90_v14 = vadd.f32 %v89_v9, %v1821_v7  ;;  %v102_v16 = vadd.f32 %v99_v11, %v98_v10  ;;  %v1887_v31 = vld [vmem:[%s2306_s9 + $0x20] sm:$0xff]  ;;  %v1894_v34 = vld [vmem:[%s2306_s9 + $0x18] sm:$0xff]  ;;  %v1901_v35 = vld [vmem:[%s2306_s9 + $0x10] sm:$0xff] }
   0x7   :  { %v1908_v38 = vld [vmem:[%s2306_s9 + $0x8] sm:$0xff]  ;;  %v1915_v39 = vld [vmem:[%s2306_s9] sm:$0xff] }
   0x8   :  { %114 = vmatpush.msra.mxu0 %v1799_v3  ;;  %135 = vmatpush.msra.mxu1 %v1799_v3  ;;  %v91_v18 = vadd.f32 %v90_v14, %v1826_v8  ;;  %v103_v19 = vadd.f32 %v102_v16, %v100_v12  ;;  %v1706_v62 = vld [vmem:[%s2308_s1] ss:$0 sm:$0xff]  ;;  %s1721_s1 = smov 8  }
   0x9   :  { %v1707_v10 = vld [vmem:[%s2309_s2] ss:$0 sm:$0xff] }
   0xa   :  { %115 = vmatpush.msra.mxu0 %v1816_v6  ;;  %136 = vmatpush.msra.mxu1 %v1816_v6  ;;  %v92_v21 = vrot.slane %v91_v18, 4  ;;  %v104_v22 = vadd.f32 %v103_v19, %v101_v15 }
   0xc   :  { %116 = vmatpush.msra.mxu0 %v1841_v13  ;;  %137 = vmatpush.msra.mxu1 %v1841_v13  ;;  %v93_v24 = vadd.f32 %v92_v21, %v91_v18  ;;  %v105_v25 = vrot.slane %v104_v22, 4 }
   0xe   :  { %117 = vmatpush.msra.mxu0 %v1851_v17  ;;  %138 = vmatpush.msra.mxu1 %v1851_v17  ;;  %v94_v27 = vrot.slane %v93_v24, 2  ;;  %v106_v28 = vadd.f32 %v105_v25, %v104_v22 }
  0x10   :  { %118 = vmatpush.msra.mxu0 %v1859_v20  ;;  %139 = vmatpush.msra.mxu1 %v1859_v20  ;;  %v107_v30 = vrot.slane %v106_v28, 2  ;;  %v95_v32 = vadd.f32 %v94_v27, %v93_v24 }
  0x12   :  { %119 = vmatpush.msra.mxu0 %v1866_v23  ;;  %140 = vmatpush.msra.mxu1 %v1866_v23  ;;  %v108_v33 = vadd.f32 %v107_v30, %v106_v28  ;;  %v96_v36 = vrot.slane %v95_v32, 1 }
  0x14   :  { %120 = vmatpush.msra.mxu0 %v1873_v26  ;;  %141 = vmatpush.msra.mxu1 %v1873_v26  ;;  %v109_v37 = vrot.slane %v108_v33, 1  ;;  %v97_v40 = vadd.f32 %v96_v36, %v95_v32 }
  0x16   :  { %121 = vmatpush.msra.mxu0 %v1880_v29  ;;  %142 = vmatpush.msra.mxu1 %v1880_v29  ;;  %v110_v41 = vadd.f32 %v109_v37, %v108_v33  ;;  %v40_v37 = vlaneseq }
  0x18   :  { %122 = vmatpush.msra.mxu0 %v1887_v31  ;;  %143 = vmatpush.msra.mxu1 %v1887_v31  ;;  %vm42_vm7 = vcmp.lt.s32.totalorder %v40_v37, 144 }
  0x19   :  { %53 = vst.msk [vmem:[#allocation2 + $0x51] ss:$8 sm:$0x3] %vm42_vm7, %v1720_v51 }
  0x1a   :  { %123 = vmatpush.msra.mxu0 %v1894_v34  ;;  %144 = vmatpush.msra.mxu1 %v1894_v34  ;;  %62 = vst.msk [vmem:[#allocation2 + $0x50] sm:$0x3] %vm58_vm6, %v1720_v51 }
  0x1b   :  { %70 = vst.msk [vmem:[#allocation2 + $0x58] sm:$0x3] %vm66_vm8, %v1720_v51 }
  0x1c   :  { %124 = vmatpush.msra.mxu0 %v1901_v35  ;;  %145 = vmatpush.msra.mxu1 %v1901_v35  ;;  %44 = vst.msk [vmem:[#allocation2] ss:$8 sm:$0x3] %vm42_vm7, %v1720_v51 }
  0x1d   :  { %47 = vst.msk [vmem:[#allocation2 + $0x30] ss:$8 sm:$0x3] %vm42_vm7, %v1720_v51 }
  0x1e   :  { %125 = vmatpush.msra.mxu0 %v1908_v38  ;;  %146 = vmatpush.msra.mxu1 %v1908_v38  ;;  %50 = vst.msk [vmem:[#allocation2 + $0x21] ss:$8 sm:$0x3] %vm42_vm7, %v1720_v51 }
  0x1f   :  { %56 = vst.msk [vmem:[#allocation2] sm:$0xff] %vm55_vm0, %v1720_v51 }
  0x20   :  { %126 = vmatpush.msra.mxu0 %v1915_v39  ;;  %147 = vmatpush.msra.mxu1 %v1915_v39  ;;  %59 = vst.msk [vmem:[#allocation2 + $0x20] sm:$0x3] %vm58_vm6, %v1720_v51 }
  0x21   :  { %127 = vmatmul.f32.vlgmr.msra.gmra.mxu0 %v97_v40  ;;  %148 = vmatmul.f32.vlgmr.msra.gmra.mxu1 %v110_v41  ;;  %v1666_v40 = vld [vmem:[%s2310_s7 + $0x80] sm:$0xff]  ;;  %v1665_v41 = vld [vmem:[%s2310_s7 + $0x78] sm:$0xff]  ;;  %60 = vst.msk [vmem:[#allocation2 + $0x30] sm:$0xff] %vm55_vm0, %v1720_v51 }
  0x22   :  { %762 = vmatpush.msrb.mxu0 %v1780_v0  ;;  %404 = vmatpush.bf16.msra.mxu2 %v1666_v40  ;;  %64 = vst.msk [vmem:[#allocation2 + $0x8] sm:$0xff] %vm63_vm1, %v1720_v51 }
  0x23   :  { %67 = vst.msk [vmem:[#allocation2 + $0x28] sm:$0x3] %vm66_vm8, %v1720_v51 }
  0x24   :  { %763 = vmatpush.msrb.mxu0 %v1785_v1  ;;  %68 = vst.msk [vmem:[#allocation2 + $0x38] sm:$0xff] %vm63_vm1, %v1720_v51  ;;  %v1659_v51 = vld [vmem:[%s2310_s7 + $0x48] sm:$0xff]  ;;  %vm556_vm1 = vcmask 1045504  }
  0x26   :  { %764 = vmatpush.msrb.mxu0 %v1792_v2  ;;  %405 = vmatpush.bf16.msra.mxu2 %v1665_v41 }
  0x28   :  { %765 = vmatpush.msrb.mxu0 %v1799_v3 }
  0x2a   :  { %766 = vmatpush.msrb.mxu0 %v1816_v6 }
  0x2c   :  { %767 = vmatpush.msrb.mxu0 %v1841_v13 }
  0x2e   :  { %768 = vmatpush.msrb.mxu0 %v1851_v17 }
  0x30   :  { %769 = vmatpush.msrb.mxu0 %v1859_v20 }
  0x32   :  { %770 = vmatpush.msrb.mxu0 %v1866_v23 }
  0x34   :  { %771 = vmatpush.msrb.mxu0 %v1873_v26 }
  0x36   :  { %772 = vmatpush.msrb.mxu0 %v1880_v29 }
  0x38   :  { %773 = vmatpush.msrb.mxu0 %v1887_v31 }
  0x3a   :  { %774 = vmatpush.msrb.mxu0 %v1894_v34 }
  0x3c   :  { %775 = vmatpush.msrb.mxu0 %v1901_v35 }
  0x3e   :  { %776 = vmatpush.msrb.mxu0 %v1908_v38 }
  0x40   :  { %777 = vmatpush.msrb.mxu0 %v1915_v39 }
  0x9e   :  { %v128_v42 = vpop.f32.mrf.mxu0  ;;  %v149_v43 = vpop.f32.mrf.mxu1 }
  0x9f   :  { %v131_v44 = vmul.f32 0.001953125, %v128_v42  ;;  %v152_v45 = vmul.f32 0.001953125, %v149_v43  ;;  %v1664_v42 = vld [vmem:[%s2310_s7 + $0x70] sm:$0xff]  ;;  %v1663_v43 = vld [vmem:[%s2310_s7 + $0x68] sm:$0xff] }
  0xa0   :  { %406 = vmatpush.bf16.msra.mxu2 %v1664_v42 }
  0xa1   :  { %v153_v46 = vmul.f32 %v131_v44, %v131_v44  ;;  %v155_v54 = vperm.slane %v131_v44, 0  ;;  %v1662_v44 = vld [vmem:[%s2310_s7 + $0x60] sm:$0xff] }
  0xa3   :  { %v154_v47 = vsub.f32 %v152_v45, %v153_v46  ;;  %v158_v57 = vsub.f32 %v1821_v7, %v155_v54  ;;  %v159_v59 = vsub.f32 %v1826_v8, %v155_v54  ;;  %v157_v61 = vsub.f32 %v1811_v5, %v155_v54  ;;  %v1661_v46 = vld [vmem:[%s2310_s7 + $0x58] sm:$0xff] }
  0xa4   :  { %v156_v63 = vsub.f32 %v1806_v4, %v155_v54  ;;  %407 = vmatpush.bf16.msra.mxu2 %v1663_v43  ;;  %v1674_v54 = vld [vmem:[%s2310_s7 + $0xc0] sm:$0xff] }
  0xa5   :  { %v160_v48 = vadd.f32 1e-05, %v154_v47  ;;  %v1658_v47 = vld [vmem:[%s2310_s7 + $0x40] sm:$0xff] }
  0xa6   :  { %528 = vmatpush.bf16.msrb.mxu1 %v1658_v47 }
  0xa7   :  { %1712 = vrsqrt.f32 %v160_v48  ;;  %vm167_vm3 = vweird.f32 %v160_v48 }
  0xa8   :  { %408 = vmatpush.bf16.msra.mxu2 %v1662_v44 }
  0xac   :  { %409 = vmatpush.bf16.msra.mxu2 %v1661_v46 }
  0xad   :  { %v1713_v49 = vpop.eup %1712 }
  0xae   :  { %v162_v50 = vmul.f32 %v1713_v49, %v160_v48  ;;  %vm168_vm2 = vweird.f32 %v1713_v49  ;;  %v1667_v48 = vld [vmem:[%s2310_s7 + $0x88] sm:$0xff] }
  0xaf   :  { %vm169_vm4 = vmor %vm167_vm3, %vm168_vm2  ;;  %430 = vmatpush.bf16.msra.mxu3 %v1667_v48 }
  0xb0   :  { %v163_v52 = vmul.f32 %v1713_v49, %v162_v50 }
  0xb2   :  { %v164_v53 = vmul.f32 0.5, %v163_v52  ;;  %v1675_v52 = vld [vmem:[%s2310_s7 + $0xc8] sm:$0xff] }
  0xb3   :  { %668 = vmatpush.bf16.msra.mxu1 %v1675_v52 }
  0xb4   :  { %v165_v55 = vsub.f32 1.5, %v164_v53  ;;  %v1657_v53 = vld [vmem:[%s2310_s7 + $0x38] sm:$0xff] }
  0xb5   :  { %502 = vmatpush.bf16.msrb.mxu3 %v1657_v53 }
  0xb6   :  { %v166_v56 = vmul.f32 %v1713_v49, %v165_v55  ;;  %v1676_v55 = vld [vmem:[%s2310_s7 + $0xd0] sm:$0xff] }
  0xb7   :  { %669 = vmatpush.bf16.msra.mxu1 %v1674_v54 }
  0xb8   :  { %v170_v58 = vsel %vm169_vm4, %v1713_v49, %v166_v56  ;;  %v1660_v49 = vld [vmem:[%s2310_s7 + $0x50] sm:$0xff] }
  0xb9   :  { %v171_v60 = vperm.slane %v170_v58, 0  ;;  %410 = vmatpush.bf16.msra.mxu2 %v1660_v49  ;;  %v1656_v56 = vld [vmem:[%s2310_s7 + $0x30] sm:$0xff]  ;;  %v1655_v58 = vld [vmem:[%s2310_s7 + $0x28] sm:$0xff] }
  0xba   :  { %503 = vmatpush.bf16.msrb.mxu3 %v1656_v56 }
  0xbb   :  { %v173_v9 = vmul.f32 %v171_v60, %v157_v61  ;;  %v172_v11 = vmul.f32 %v171_v60, %v156_v63  ;;  %v174_v12 = vmul.f32 %v171_v60, %v158_v57  ;;  %v175_v7 = vmul.f32 %v171_v60, %v159_v59  ;;  %v1673_v57 = vld [vmem:[%s2310_s7 + $0xb8] sm:$0xff]  ;;  %v1672_v59 = vld [vmem:[%s2310_s7 + $0xb0] sm:$0xff]  ;;  %v1671_v63 = vld [vmem:[%s2310_s7 + $0xa8] sm:$0xff] }
  0xbc   :  { %670 = vmatpush.bf16.msra.mxu1 %v1673_v57 }
  0xbd   :  { %v180_v14 = vmul.f32 %v1706_v62, %v173_v9  ;;  %v179_v15 = vmul.f32 %v1706_v62, %v172_v11  ;;  %v181_v8 = vmul.f32 %v1706_v62, %v174_v12  ;;  %v182_v16 = vmul.f32 %v1706_v62, %v175_v7  ;;  %411 = vmatpush.bf16.msra.mxu2 %v1659_v51  ;;  %v1654_v62 = vld [vmem:[%s2310_s7 + $0x20] sm:$0xff]  ;;  %v1653_v11 = vld [vmem:[%s2310_s7 + $0x18] sm:$0xff]  ;;  %v1652_v7 = vld [vmem:[%s2310_s7 + $0x10] sm:$0xff] }
  0xbe   :  { %504 = vmatpush.bf16.msrb.mxu3 %v1655_v58  ;;  %v1670_v12 = vld [vmem:[%s2310_s7 + $0xa0] sm:$0xff] }
  0xbf   :  { %v187_v18 = vadd.f32 %v1707_v10, %v180_v14  ;;  %v186_v5 = vadd.f32 %v1707_v10, %v179_v15  ;;  %v188_v19 = vadd.f32 %v1707_v10, %v181_v8  ;;  %v189_v21 = vadd.f32 %v1707_v10, %v182_v16  ;;  %v1669_v14 = vld [vmem:[%s2310_s7 + $0x98] sm:$0xff]  ;;  %v1651_v15 = vld [vmem:[%s2310_s7 + $0x8] sm:$0xff]  ;;  %v1668_v8 = vld [vmem:[%s2310_s7 + $0x90] sm:$0xff] }
  0xc0   :  { %671 = vmatpush.bf16.msra.mxu1 %v1672_v59 }
  0xc1   :  { %v191_v22 = vmax.f32 %v187_v18, 0.0  ;;  %v190_v24 = vmax.f32 %v186_v5, 0.0  ;;  %v192_v25 = vmax.f32 %v188_v19, 0.0  ;;  %v193_v4 = vmax.f32 %v189_v21, 0.0  ;;  %694 = vmatpush.bf16.msrb.mxu2 %v1676_v55 }
  0xc2   :  { %505 = vmatpush.bf16.msrb.mxu3 %v1654_v62 }
  0xc3   :  { %v201_v27 = vrot.slane %v191_v22, 7  ;;  %v200_v28 = vrot.slane %v190_v24, 7  ;;  %v203_v30 = vrot.slane %v192_v25, 7  ;;  %v204_v32 = vrot.slane %v193_v4, 7  ;;  %v1650_v22 = vld [vmem:[%s2310_s7] sm:$0xff] }
  0xc4   :  { %672 = vmatpush.bf16.msra.mxu1 %v1671_v63 }
  0xc5   :  { %210 = vrot.lane.b32.xlu1 %v201_v27, %s1721_s1  ;;  %206 = vrot.lane.b32.xlu0 %v200_v28, %s1721_s1  ;;  %v205_v33 = vsel %vm199_vm5, %v203_v30, %v204_v32  ;;  %v202_v36 = vsel %vm199_vm5, %v200_v28, %v201_v27 }
  0xc6   :  { %214 = vrot.lane.b32.xlu2 %v205_v33, %s1721_s1  ;;  %506 = vmatpush.bf16.msrb.mxu3 %v1653_v11 }
  0xc8   :  { %673 = vmatpush.bf16.msra.mxu1 %v1670_v12 }
  0xca   :  { %507 = vmatpush.bf16.msrb.mxu3 %v1652_v7 }
  0xcc   :  { %674 = vmatpush.bf16.msra.mxu1 %v1669_v14 }
  0xcd   :  { %212 = vrot.lane.b32.xlu1 %v203_v30, %s1721_s1  ;;  %208 = vrot.lane.b32.xlu0 %v202_v36, %s1721_s1 }
  0xce   :  { %216 = vrot.lane.b32.xlu2 %v204_v32, %s1721_s1  ;;  %508 = vmatpush.bf16.msrb.mxu3 %v1651_v15 }
  0xd0   :  { %675 = vmatpush.bf16.msra.mxu1 %v1668_v8 }
  0xd2   :  { %509 = vmatpush.bf16.msrb.mxu3 %v1650_v22 }
 0x120   :  { %v215_v45 = vpop.permute.xlu2 %214 }
 0x121   :  { %237 = vst.msk [vmem:[#allocation2 + $0x40] sm:$0xff] %vm228_vm9, %v215_v45 }
 0x122   :  { %238 = vst.msk [vmem:[#allocation2 + $0x48] sm:$0xff] %vm55_vm0, %v215_v45 }
 0x128   :  { %v217_v50 = vpop.permute.xlu2 %216  ;;  %v2087_v47 = vld [vmem:[#allocation2 + $0x40] sm:$0xff] }
 0x129   :  { %239 = vst.msk [vmem:[#allocation2 + $0x50] sm:$0x1] %vm231_vm10, %v217_v50  ;;  %v2090_v49 = vld [vmem:[#allocation2 + $0x48] sm:$0xff]  ;;  %v303_v54 = vrot.slane %v2087_v47, 1 }
 0x12a   :  { %240 = vst.msk [vmem:[#allocation2 + $0x58] sm:$0x1] %vm233_vm11, %v217_v50  ;;  %v306_v55 = vrot.slane %v2090_v49, 1 }
 0x130   :  { %v277_v48 = vld [vmem:[#allocation2 + $0x50] sm:$0x1] }
 0x131   :  { %v278_v51 = vld [vmem:[#allocation2 + $0x58] sm:$0x1]  ;;  %v546_v8 = vld [vmem:[#allocation2 + $0x50] sm:$0x3] }
 0x137   :  { %v211_v60 = vpop.permute.xlu1 %210  ;;  %v207_v61 = vpop.permute.xlu0 %206 }
 0x138   :  { %232 = vst.msk [vmem:[#allocation2 + $0x20] sm:$0x1] %vm231_vm10, %v211_v60 }
 0x139   :  { %234 = vst.msk [vmem:[#allocation2 + $0x28] sm:$0x1] %vm233_vm11, %v211_v60 }
 0x13a   :  { %225 = vst.msk [vmem:[#allocation2] sm:$0xfe] %vm224_vm12, %v207_v61 }
 0x13b   :  { %227 = vst.msk [vmem:[#allocation2 + $0x8] sm:$0xfe] %vm226_vm13, %v207_v61 }
 0x13f   :  { %v213_v9 = vpop.permute.xlu1 %212  ;;  %v209_v10 = vpop.permute.xlu0 %208  ;;  %v273_v18 = vld [vmem:[#allocation2 + $0x20] sm:$0x1] }
 0x140   :  { %235 = vst.msk [vmem:[#allocation2 + $0x30] sm:$0xfe] %vm224_vm12, %v213_v9  ;;  %v274_v19 = vld [vmem:[#allocation2 + $0x28] sm:$0x1]  ;;  %v298_v28 = vrot.slane %v273_v18, 1 }
 0x141   :  { %236 = vst.msk [vmem:[#allocation2 + $0x38] sm:$0xfe] %vm226_vm13, %v213_v9  ;;  %v271_v16 = vld [vmem:[#allocation2] sm:$0xfe]  ;;  %v300_v36 = vrot.slane %v274_v19, 1  ;;  %v568_v19 = vrot.slane %v2087_v47, 2 }
 0x142   :  { %229 = vst.msk [vmem:[#allocation2 + $0x10] sm:$0xff] %vm228_vm9, %v209_v10  ;;  %v272_v5 = vld [vmem:[#allocation2 + $0x8] sm:$0xfe]  ;;  %v292_v4 = vrot.slane %v271_v16, 1  ;;  %v542_v61 = vld [vmem:[#allocation2 + $0x20] sm:$0x3] }
 0x143   :  { %230 = vst.msk [vmem:[#allocation2 + $0x18] sm:$0xff] %vm55_vm0, %v209_v10  ;;  %v242_v24 = vld [vmem:[#allocation2 + $0x8] sm:$0xff]  ;;  %v295_v32 = vrot.slane %v272_v5, 1  ;;  %v241_v14 = vld [vmem:[#allocation2] sm:$0xff]  ;;  %v547_v5 = vld [vmem:[#allocation2 + $0x58] sm:$0x3] }
 0x144   :  { %v541_v62 = vld [vmem:[#allocation2 + $0x8] sm:$0xfc]  ;;  %v543_v63 = vld [vmem:[#allocation2 + $0x28] sm:$0x3] }
 0x145   :  { %v560_v11 = vrot.slane %v541_v62, 2  ;;  %v565_v12 = vrot.slane %v543_v63, 2 }
 0x147   :  { %v275_v45 = vld [vmem:[#allocation2 + $0x30] sm:$0xfe] }
 0x148   :  { %v276_v46 = vld [vmem:[#allocation2 + $0x38] sm:$0xfe]  ;;  %v302_v50 = vrot.slane %v275_v45, 1 }
 0x149   :  { %v2069_v21 = vld [vmem:[#allocation2 + $0x10] sm:$0xff]  ;;  %v305_v52 = vrot.slane %v276_v46, 1  ;;  %v246_v53 = vld [vmem:[#allocation2 + $0x38] sm:$0xff] }
 0x14a   :  { %v2074_v25 = vld [vmem:[#allocation2 + $0x18] sm:$0xff]  ;;  %v293_v27 = vrot.slane %v2069_v21, 1  ;;  %v304_v56 = vsel %vm291_vm14, %v302_v50, %v303_v54 }
 0x14b   :  { %v250_v30 = vpack.c.bf16 %v2074_v25, %v242_v24  ;;  %v296_v33 = vrot.slane %v2074_v25, 1  ;;  %v307_v57 = vsel %vm291_vm14, %v305_v52, %v306_v55  ;;  %v561_v10 = vrot.slane %v2074_v25, 2  ;;  %v545_v16 = vld [vmem:[#allocation2 + $0x38] sm:$0xfc] }
 0x14c   :  { %v294_v37 = vsel %vm291_vm14, %v292_v4, %v293_v27  ;;  %v299_v40 = vsel %vm291_vm14, %v293_v27, %v298_v28  ;;  %v570_v22 = vrot.slane %v545_v16, 2  ;;  %v575_v25 = vrot.slane %v547_v5, 2  ;;  %v245_v27 = vld [vmem:[#allocation2 + $0x30] sm:$0xff] }
 0x14d   :  { %1442 = vmatmul.msk.bf16.vlgmr.msrb.gmra.mxu1 %vm397_vm15, %v250_v30  ;;  %v320_v41 = vpack.c.bf16 %v299_v40, %v294_v37  ;;  %v297_v42 = vsel %vm291_vm14, %v295_v32, %v296_v33  ;;  %v301_v43 = vsel %vm291_vm14, %v296_v33, %v300_v36  ;;  %v566_v7 = vsel %vm556_vm1, %v561_v10, %v565_v12 }
 0x14e   :  { %v321_v44 = vpack.c.bf16 %v301_v43, %v297_v42  ;;  %v251_v32 = vpack.c.bf16 %v2087_v47, %v245_v27 }
 0x14f   :  { %412 = vmatmul.bf16.vlgmr.msra.gmra.mxu2 %v320_v41 }
 0x150   :  { %1404 = vmatmul.msk.bf16.vlgmr.msra.gmra.mxu3 %vm397_vm15, %v321_v44 }
 0x151   :  { %741 = vmatpush.msra.mxu3 %v1780_v0  ;;  %v308_v0 = vrot.slane %v277_v48, 1 }
 0x153   :  { %742 = vmatpush.msra.mxu3 %v1785_v1  ;;  %v310_v1 = vrot.slane %v278_v51, 1  ;;  %v309_v58 = vsel %vm291_vm14, %v303_v54, %v308_v0 }
 0x155   :  { %743 = vmatpush.msra.mxu3 %v1792_v2  ;;  %v252_v2 = vpack.c.bf16 %v2090_v49, %v246_v53  ;;  %v311_v59 = vsel %vm291_vm14, %v306_v55, %v310_v1 }
 0x156   :  { %v323_v60 = vpack.c.bf16 %v311_v59, %v307_v57 }
 0x157   :  { %744 = vmatpush.msra.mxu3 %v1799_v3  ;;  %v322_v3 = vpack.c.bf16 %v309_v58, %v304_v56 }
 0x159   :  { %745 = vmatpush.msra.mxu3 %v1816_v6  ;;  %v540_v6 = vld [vmem:[#allocation2] sm:$0xfc] }
 0x15a   :  { %v557_v9 = vrot.slane %v540_v6, 2 }
 0x15b   :  { %746 = vmatpush.msra.mxu3 %v1841_v13  ;;  %v558_v13 = vrot.slane %v2069_v21, 2 }
 0x15d   :  { %1443 = vmatmul.msk.bf16.gmra.mxu1 %vm397_vm15, %v252_v2  ;;  %747 = vmatpush.msra.mxu3 %v1851_v17  ;;  %v563_v17 = vrot.slane %v542_v61, 2 }
 0x15f   :  { %417 = vmatmul.bf16.gmra.mxu2 %v322_v3  ;;  %748 = vmatpush.msra.mxu3 %v1859_v20  ;;  %v559_v20 = vsel %vm556_vm1, %v557_v9, %v558_v13 }
 0x160   :  { %1405 = vmatmul.msk.bf16.gmra.mxu3 %vm397_vm15, %v323_v60 }
 0x161   :  { %749 = vmatpush.msra.mxu3 %v1866_v23  ;;  %v564_v23 = vsel %vm556_vm1, %v558_v13, %v563_v17 }
 0x163   :  { %750 = vmatpush.msra.mxu3 %v1873_v26  ;;  %v562_v26 = vsel %vm556_vm1, %v560_v11, %v561_v10  ;;  %v1708_v10 = vld [vmem:[%s2311_s3] ss:$0 sm:$0xff] }
 0x164   :  { %v586_v15 = vpack.c.bf16 %v566_v7, %v562_v26 }
 0x165   :  { %751 = vmatpush.msra.mxu3 %v1880_v29  ;;  %v585_v29 = vpack.c.bf16 %v564_v23, %v559_v20 }
 0x167   :  { %752 = vmatpush.msra.mxu3 %v1887_v31  ;;  %v249_v31 = vpack.c.bf16 %v2069_v21, %v241_v14 }
 0x169   :  { %753 = vmatpush.msra.mxu3 %v1894_v34  ;;  %v544_v34 = vld [vmem:[#allocation2 + $0x30] sm:$0xfc] }
 0x16a   :  { %v567_v18 = vrot.slane %v544_v34, 2 }
 0x16b   :  { %754 = vmatpush.msra.mxu3 %v1901_v35  ;;  %v573_v35 = vrot.slane %v546_v8, 2 }
 0x16c   :  { %v569_v24 = vsel %vm556_vm1, %v567_v18, %v568_v19 }
 0x16d   :  { %676 = vmatmul.bf16.vlgmr.msra.gmra.mxu1 %v585_v29  ;;  %755 = vmatpush.msra.mxu3 %v1908_v38  ;;  %v571_v38 = vrot.slane %v2090_v49, 2  ;;  %v574_v21 = vsel %vm556_vm1, %v568_v19, %v573_v35 }
 0x16f   :  { %1498 = vmatmul.msk.bf16.vlgmr.msrb.gmra.mxu2 %vm397_vm15, %v586_v15  ;;  %756 = vmatpush.msra.mxu3 %v1915_v39  ;;  %v572_v4 = vsel %vm556_vm1, %v570_v22, %v571_v38  ;;  %v587_v39 = vpack.c.bf16 %v574_v21, %v569_v24  ;;  %v576_v28 = vsel %vm556_vm1, %v571_v38, %v575_v25 }
 0x170   :  { %510 = vmatmul.bf16.vlgmr.msrb.gmra.mxu3 %v249_v31  ;;  %v588_v30 = vpack.c.bf16 %v576_v28, %v572_v4 }
 0x17d   :  { %681 = vmatmul.bf16.gmra.mxu1 %v587_v39 }
 0x17f   :  { %1499 = vmatmul.msk.bf16.gmra.mxu2 %vm397_vm15, %v588_v30 }
 0x180   :  { %515 = vmatmul.bf16.gmra.mxu3 %v251_v32 }
 0x1ca   :  { %v530_v33 = vpop.f32.mrf.mxu1 }
 0x1d2   :  { %v532_v36 = vpop.f32.mrf.mxu1  ;;  %v413_v37 = vpop.f32.mrf.mxu2 }
 0x1d3   :  { %v432_v40 = vpop.f32.mrf.mxu3 }
 0x1d4   :  { %v433_v55 = vadd.f32 %v432_v40, %v413_v37 }
 0x1da   :  { %v415_v41 = vpop.f32.mrf.mxu2  ;;  %v535_v42 = vpop.f32.mrf.mxu1 }
 0x1db   :  { %v434_v43 = vpop.f32.mrf.mxu3 }
 0x1dc   :  { %v435_v0 = vadd.f32 %v434_v43, %v415_v41 }
 0x1e2   :  { %v418_v44 = vpop.f32.mrf.mxu2  ;;  %v537_v46 = vpop.f32.mrf.mxu1 }
 0x1e3   :  { %v437_v45 = vpop.f32.mrf.mxu3 }
 0x1e4   :  { %v438_v2 = vadd.f32 %v437_v45, %v418_v44 }
 0x1ea   :  { %v420_v48 = vpop.f32.mrf.mxu2  ;;  %v677_v50 = vpop.f32.mrf.mxu1 }
 0x1eb   :  { %v439_v49 = vpop.f32.mrf.mxu3 }
 0x1ec   :  { %v440_v23 = vadd.f32 %v439_v49, %v420_v48 }
 0x1f2   :  { %v696_v51 = vpop.f32.mrf.mxu2  ;;  %v679_v53 = vpop.f32.mrf.mxu1 }
 0x1f3   :  { %v511_v52 = vpop.f32.mrf.mxu3  ;;  %v697_v13 = vadd.f32 %v696_v51, %v677_v50 }
 0x1f4   :  { %v512_v56 = vadd.f32 %v511_v52, %v433_v55 }
 0x1f6   :  { %v531_v60 = vadd.f32 %v530_v33, %v512_v56 }
 0x1f8   :  { %v706_v17 = vadd.f32 %v697_v13, %v531_v60  ;;  %v1709_v60 = vld [vmem:[%s2312_s4] ss:$0 sm:$0xff] }
 0x1fa   :  { %v698_v47 = vpop.f32.mrf.mxu2  ;;  %v682_v3 = vpop.f32.mrf.mxu1  ;;  %v713_v7 = vadd.f32 %v1708_v10, %v706_v17 }
 0x1fb   :  { %v513_v54 = vpop.f32.mrf.mxu3  ;;  %v699_v6 = vadd.f32 %v698_v47, %v679_v53 }
 0x1fc   :  { %v514_v1 = vadd.f32 %v513_v54, %v435_v0  ;;  %v728_v16 = vmul.f32 %v713_v7, %v713_v7 }
 0x1fe   :  { %v533_v57 = vadd.f32 %v532_v36, %v514_v1 }
 0x200   :  { %v707_v62 = vadd.f32 %v699_v6, %v533_v57 }
 0x202   :  { %v701_v58 = vpop.f32.mrf.mxu2  ;;  %v2133_v11 = vadd.f32 %v1708_v10, %v707_v62  ;;  %v684_v15 = vpop.f32.mrf.mxu1 }
 0x203   :  { %v516_v59 = vpop.f32.mrf.mxu3  ;;  %v702_v9 = vadd.f32 %v701_v58, %v682_v3 }
 0x204   :  { %v517_v61 = vadd.f32 %v516_v59, %v438_v2  ;;  %v729_v31 = vmul.f32 %v2133_v11, %v2133_v11  ;;  %v719_v18 = vadd.f32 %v2133_v11, %v713_v7 }
 0x206   :  { %v536_v63 = vadd.f32 %v535_v42, %v517_v61  ;;  %v732_v35 = vadd.f32 %v729_v31, %v728_v16  ;;  %v1710_v61 = vld [vmem:[%s2313_s5] ss:$0 sm:$0xff] }
 0x208   :  { %v708_v20 = vadd.f32 %v702_v9, %v536_v63 }
 0x20a   :  { %v703_v26 = vpop.f32.mrf.mxu2  ;;  %v2135_v29 = vadd.f32 %v1708_v10, %v708_v20 }
 0x20b   :  { %v518_v12 = vpop.f32.mrf.mxu3  ;;  %v704_v8 = vadd.f32 %v703_v26, %v684_v15 }
 0x20c   :  { %v519_v14 = vadd.f32 %v518_v12, %v440_v23  ;;  %v730_v5 = vmul.f32 %v2135_v29, %v2135_v29  ;;  %v720_v22 = vadd.f32 %v719_v18, %v2135_v29 }
 0x20e   :  { %v538_v34 = vadd.f32 %v537_v46, %v519_v14  ;;  %v733_v38 = vadd.f32 %v732_v35, %v730_v5  ;;  %v1693_v35 = vld [vmem:[%s2314_s8 + $0x80] sm:$0xff] }
 0x20f   :  { %1026 = vmatpush.bf16.msrb.mxu1 %v1693_v35 }
 0x210   :  { %v709_v19 = vadd.f32 %v704_v8, %v538_v34 }
 0x212   :  { %v716_v24 = vadd.f32 %v1708_v10, %v709_v19  ;;  %v1684_v19 = vld [vmem:[%s2314_s8 + $0x38] sm:$0xff] }
 0x213   :  { %1124 = vmatpush.bf16.msra.mxu2 %v1684_v19 }
 0x214   :  { %v721_v25 = vadd.f32 %v720_v22, %v716_v24  ;;  %v731_v21 = vmul.f32 %v716_v24, %v716_v24  ;;  %v1683_v22 = vld [vmem:[%s2314_s8 + $0x30] sm:$0xff] }
 0x216   :  { %v722_v4 = vrot.slane %v721_v25, 4  ;;  %v734_v39 = vadd.f32 %v733_v38, %v731_v21  ;;  %v1682_v38 = vld [vmem:[%s2314_s8 + $0x28] sm:$0xff]  ;;  %v1681_v21 = vld [vmem:[%s2314_s8 + $0x20] sm:$0xff] }
 0x217   :  { %1125 = vmatpush.bf16.msra.mxu2 %v1683_v22 }
 0x218   :  { %v723_v27 = vadd.f32 %v722_v4, %v721_v25  ;;  %v735_v28 = vrot.slane %v734_v39, 4  ;;  %v1691_v25 = vld [vmem:[%s2314_s8 + $0x70] sm:$0xff]  ;;  %v1690_v4 = vld [vmem:[%s2314_s8 + $0x68] sm:$0xff] }
 0x21a   :  { %v724_v30 = vrot.slane %v723_v27, 2  ;;  %v736_v32 = vadd.f32 %v735_v28, %v734_v39  ;;  %v1680_v39 = vld [vmem:[%s2314_s8 + $0x18] sm:$0xff]  ;;  %v1679_v28 = vld [vmem:[%s2314_s8 + $0x10] sm:$0xff] }
 0x21b   :  { %1126 = vmatpush.bf16.msra.mxu2 %v1682_v38 }
 0x21c   :  { %v725_v33 = vadd.f32 %v724_v30, %v723_v27  ;;  %v737_v36 = vrot.slane %v736_v32, 2  ;;  %v1689_v27 = vld [vmem:[%s2314_s8 + $0x60] sm:$0xff]  ;;  %v1688_v30 = vld [vmem:[%s2314_s8 + $0x58] sm:$0xff] }
 0x21e   :  { %v726_v37 = vrot.slane %v725_v33, 1  ;;  %v738_v40 = vadd.f32 %v737_v36, %v736_v32  ;;  %v1678_v32 = vld [vmem:[%s2314_s8 + $0x8] sm:$0xff]  ;;  %v1687_v36 = vld [vmem:[%s2314_s8 + $0x50] sm:$0xff] }
 0x21f   :  { %1127 = vmatpush.bf16.msra.mxu2 %v1681_v21 }
 0x220   :  { %v727_v41 = vadd.f32 %v726_v37, %v725_v33  ;;  %v739_v42 = vrot.slane %v738_v40, 1  ;;  %v1694_v33 = vld [vmem:[%s2314_s8 + $0x88] sm:$0xff] }
 0x221   :  { %1052 = vmatpush.bf16.msrb.mxu3 %v1694_v33 }
 0x222   :  { %757 = vmatmul.f32.vlgmr.msra.gmra.mxu3 %v727_v41  ;;  %v740_v43 = vadd.f32 %v739_v42, %v738_v40  ;;  %v1677_v40 = vld [vmem:[%s2314_s8] sm:$0xff]  ;;  %v1686_v42 = vld [vmem:[%s2314_s8 + $0x48] sm:$0xff] }
 0x223   :  { %1128 = vmatpush.bf16.msra.mxu2 %v1680_v39  ;;  %v1685_v41 = vld [vmem:[%s2314_s8 + $0x40] sm:$0xff] }
 0x224   :  { %778 = vmatmul.f32.vlgmr.msrb.gmra.mxu0 %v740_v43 }
 0x225   :  { %1150 = vmatpush.bf16.msra.mxu0 %v1685_v41 }
 0x227   :  { %1129 = vmatpush.bf16.msra.mxu2 %v1679_v28 }
 0x22b   :  { %1130 = vmatpush.bf16.msra.mxu2 %v1678_v32 }
 0x22f   :  { %1131 = vmatpush.bf16.msra.mxu2 %v1677_v40 }
 0x2a1   :  { %v779_v44 = vpop.f32.mrf.mxu0 }
 0x2a2   :  { %v782_v48 = vmul.f32 0.001953125, %v779_v44  ;;  %v1702_v44 = vld [vmem:[%s2314_s8 + $0xc8] sm:$0xff] }
 0x2a3   :  { %1289 = vmatpush.bf16.msra.mxu3 %v1702_v44 }
 0x2a5   :  { %v758_v45 = vpop.f32.mrf.mxu3 }
 0x2a6   :  { %v761_v46 = vmul.f32 0.001953125, %v758_v45  ;;  %v1703_v45 = vld [vmem:[%s2314_s8 + $0xd0] sm:$0xff] }
 0x2a7   :  { %1315 = vmatpush.bf16.msrb.mxu0 %v1703_v45 }
 0x2a8   :  { %v783_v49 = vmul.f32 %v761_v46, %v761_v46  ;;  %v785_v0 = vperm.slane %v761_v46, 0  ;;  %v1701_v46 = vld [vmem:[%s2314_s8 + $0xc0] sm:$0xff] }
 0x2a9   :  { %1290 = vmatpush.bf16.msra.mxu3 %v1701_v46 }
 0x2aa   :  { %v784_v50 = vsub.f32 %v782_v48, %v783_v49  ;;  %v786_v56 = vsub.f32 %v713_v7, %v785_v0  ;;  %v787_v57 = vsub.f32 %v2133_v11, %v785_v0  ;;  %v788_v58 = vsub.f32 %v2135_v29, %v785_v0  ;;  %v1700_v48 = vld [vmem:[%s2314_s8 + $0xb8] sm:$0xff]  ;;  %v1699_v49 = vld [vmem:[%s2314_s8 + $0xb0] sm:$0xff] }
 0x2ab   :  { %v789_v3 = vsub.f32 %v716_v24, %v785_v0  ;;  %v1692_v24 = vld [vmem:[%s2314_s8 + $0x78] sm:$0xff] }
 0x2ac   :  { %v790_v51 = vadd.f32 1e-05, %v784_v50  ;;  %1027 = vmatpush.bf16.msrb.mxu1 %v1692_v24 }
 0x2ad   :  { %1291 = vmatpush.bf16.msra.mxu3 %v1700_v48 }
 0x2ae   :  { %1714 = vrsqrt.f32 %v790_v51  ;;  %vm797_vm3 = vweird.f32 %v790_v51 }
 0x2b0   :  { %1028 = vmatpush.bf16.msrb.mxu1 %v1691_v25 }
 0x2b1   :  { %1292 = vmatpush.bf16.msra.mxu3 %v1699_v49 }
 0x2b4   :  { %v1715_v52 = vpop.eup %1714  ;;  %1029 = vmatpush.bf16.msrb.mxu1 %v1690_v4 }
 0x2b5   :  { %v792_v53 = vmul.f32 %v1715_v52, %v790_v51  ;;  %vm798_vm2 = vweird.f32 %v1715_v52 }
 0x2b6   :  { %vm799_vm4 = vmor %vm797_vm3, %vm798_vm2 }
 0x2b7   :  { %v793_v47 = vmul.f32 %v1715_v52, %v792_v53  ;;  %v1697_v53 = vld [vmem:[%s2314_s8 + $0xa0] sm:$0xff] }
 0x2b8   :  { %1030 = vmatpush.bf16.msrb.mxu1 %v1689_v27 }
 0x2b9   :  { %v794_v54 = vmul.f32 0.5, %v793_v47 }
 0x2bb   :  { %v795_v55 = vsub.f32 1.5, %v794_v54  ;;  %v1696_v54 = vld [vmem:[%s2314_s8 + $0x98] sm:$0xff] }
 0x2bc   :  { %1031 = vmatpush.bf16.msrb.mxu1 %v1688_v30 }
 0x2bd   :  { %v796_v1 = vmul.f32 %v1715_v52, %v795_v55 }
 0x2bf   :  { %v800_v2 = vsel %vm799_vm4, %v1715_v52, %v796_v1  ;;  %v1698_v52 = vld [vmem:[%s2314_s8 + $0xa8] sm:$0xff] }
 0x2c0   :  { %v801_v59 = vperm.slane %v800_v2, 0  ;;  %1032 = vmatpush.bf16.msrb.mxu1 %v1687_v36  ;;  %1293 = vmatpush.bf16.msra.mxu3 %v1698_v52 }
 0x2c2   :  { %v803_v6 = vmul.f32 %v801_v59, %v787_v57  ;;  %v802_v13 = vmul.f32 %v801_v59, %v786_v56  ;;  %v805_v62 = vmul.f32 %v801_v59, %v789_v3  ;;  %v804_v63 = vmul.f32 %v801_v59, %v788_v58 }
 0x2c4   :  { %v810_v9 = vmul.f32 %v1709_v60, %v803_v6  ;;  %v809_v17 = vmul.f32 %v1709_v60, %v802_v13  ;;  %v812_v10 = vmul.f32 %v1709_v60, %v805_v62  ;;  %v811_v20 = vmul.f32 %v1709_v60, %v804_v63  ;;  %1033 = vmatpush.bf16.msrb.mxu1 %v1686_v42  ;;  %v1695_v63 = vld [vmem:[%s2314_s8 + $0x90] sm:$0xff] }
 0x2c5   :  { %1294 = vmatpush.bf16.msra.mxu3 %v1697_v53 }
 0x2c6   :  { %v817_v23 = vadd.f32 %v1710_v61, %v810_v9  ;;  %v816_v11 = vadd.f32 %v1710_v61, %v809_v17  ;;  %v819_v7 = vadd.f32 %v1710_v61, %v812_v10  ;;  %v818_v29 = vadd.f32 %v1710_v61, %v811_v20 }
 0x2c8   :  { %v821_v12 = vmax.f32 %v817_v23, 0.0  ;;  %v820_v26 = vmax.f32 %v816_v11, 0.0  ;;  %v823_v34 = vmax.f32 %v819_v7, 0.0  ;;  %v822_v8 = vmax.f32 %v818_v29, 0.0 }
 0x2c9   :  { %1295 = vmatpush.bf16.msra.mxu3 %v1696_v54 }
 0x2ca   :  { %v830_v14 = vrot.slane %v821_v12, 7  ;;  %v829_v15 = vrot.slane %v820_v26, 7  ;;  %v833_v16 = vrot.slane %v823_v34, 7  ;;  %v832_v18 = vrot.slane %v822_v8, 7 }
 0x2cc   :  { %839 = vrot.lane.b32.xlu2 %v830_v14, %s1721_s1  ;;  %835 = vrot.lane.b32.xlu0 %v829_v15, %s1721_s1  ;;  %v831_v31 = vsel %vm199_vm5, %v829_v15, %v830_v14  ;;  %v834_v5 = vsel %vm199_vm5, %v832_v18, %v833_v16 }
 0x2cd   :  { %837 = vrot.lane.b32.xlu1 %v831_v31, %s1721_s1  ;;  %1296 = vmatpush.bf16.msra.mxu3 %v1695_v63 }
 0x2d4   :  { %845 = vrot.lane.b32.xlu2 %v833_v16, %s1721_s1  ;;  %841 = vrot.lane.b32.xlu0 %v832_v18, %s1721_s1 }
 0x2d5   :  { %843 = vrot.lane.b32.xlu1 %v834_v5, %s1721_s1 }
 0x326   :  { %v840_v37 = vpop.permute.xlu2 %839 }
 0x327   :  { %857 = vst.msk [vmem:[#allocation2 + $0x20] sm:$0x1] %vm231_vm10, %v840_v37 }
 0x328   :  { %858 = vst.msk [vmem:[#allocation2 + $0x28] sm:$0x1] %vm233_vm11, %v840_v37 }
 0x32e   :  { %v846_v43 = vpop.permute.xlu2 %845  ;;  %v897_v47 = vld [vmem:[#allocation2 + $0x20] sm:$0x1] }
 0x32f   :  { %863 = vst.msk [vmem:[#allocation2 + $0x50] sm:$0x1] %vm231_vm10, %v846_v43  ;;  %v898_v56 = vld [vmem:[#allocation2 + $0x28] sm:$0x1]  ;;  %v921_v62 = vrot.slane %v897_v47, 1 }
 0x330   :  { %864 = vst.msk [vmem:[#allocation2 + $0x58] sm:$0x1] %vm233_vm11, %v846_v43  ;;  %v923_v10 = vrot.slane %v898_v56, 1  ;;  %v1165_v36 = vld [vmem:[#allocation2 + $0x28] sm:$0x3] }
 0x331   :  { %v1186_v42 = vrot.slane %v1165_v36, 2  ;;  %v1164_v43 = vld [vmem:[#allocation2 + $0x20] sm:$0x3] }
 0x332   :  { %v1184_v49 = vrot.slane %v1164_v43, 2 }
 0x336   :  { %v901_v34 = vld [vmem:[#allocation2 + $0x50] sm:$0x1] }
 0x337   :  { %v902_v18 = vld [vmem:[#allocation2 + $0x58] sm:$0x1]  ;;  %v931_v24 = vrot.slane %v901_v34, 1 }
 0x338   :  { %v933_v38 = vrot.slane %v902_v18, 1  ;;  %v1169_v54 = vld [vmem:[#allocation2 + $0x58] sm:$0x3] }
 0x339   :  { %v1196_v56 = vrot.slane %v1169_v54, 2 }
 0x33e   :  { %v836_v50 = vpop.permute.xlu0 %835 }
 0x33f   :  { %853 = vst.msk [vmem:[#allocation2] sm:$0xfe] %vm224_vm12, %v836_v50  ;;  %v838_v51 = vpop.permute.xlu1 %837 }
 0x340   :  { %854 = vst.msk [vmem:[#allocation2 + $0x8] sm:$0xfe] %vm226_vm13, %v836_v50 }
 0x341   :  { %855 = vst.msk [vmem:[#allocation2 + $0x10] sm:$0xff] %vm228_vm9, %v838_v51 }
 0x342   :  { %856 = vst.msk [vmem:[#allocation2 + $0x18] sm:$0xff] %vm55_vm0, %v838_v51 }
 0x346   :  { %v842_v0 = vpop.permute.xlu0 %841  ;;  %v865_v55 = vld [vmem:[#allocation2] sm:$0xff] }
 0x347   :  { %v895_v1 = vld [vmem:[#allocation2] sm:$0xfe]  ;;  %859 = vst.msk [vmem:[#allocation2 + $0x30] sm:$0xfe] %vm224_vm12, %v842_v0  ;;  %v844_v2 = vpop.permute.xlu1 %843  ;;  %v866_v57 = vld [vmem:[#allocation2 + $0x8] sm:$0xff] }
 0x348   :  { %v915_v58 = vrot.slane %v895_v1, 1  ;;  %v896_v3 = vld [vmem:[#allocation2 + $0x8] sm:$0xfe]  ;;  %860 = vst.msk [vmem:[#allocation2 + $0x38] sm:$0xfe] %vm226_vm13, %v842_v0  ;;  %v2247_v59 = vld [vmem:[#allocation2 + $0x10] sm:$0xff] }
 0x349   :  { %v918_v60 = vrot.slane %v896_v3, 1  ;;  %861 = vst.msk [vmem:[#allocation2 + $0x40] sm:$0xff] %vm228_vm9, %v844_v2  ;;  %v873_v6 = vpack.c.bf16 %v2247_v59, %v865_v55  ;;  %v916_v61 = vrot.slane %v2247_v59, 1  ;;  %v868_v13 = vld [vmem:[#allocation2 + $0x18] sm:$0xff]  ;;  %v1163_v33 = vld [vmem:[#allocation2 + $0x8] sm:$0xfc] }
 0x34a   :  { %862 = vst.msk [vmem:[#allocation2 + $0x48] sm:$0xff] %vm55_vm0, %v844_v2  ;;  %v874_v9 = vpack.c.bf16 %v868_v13, %v866_v57  ;;  %v919_v17 = vrot.slane %v868_v13, 1  ;;  %v1182_v37 = vrot.slane %v868_v13, 2  ;;  %v1181_v40 = vrot.slane %v1163_v33, 2  ;;  %v1162_v41 = vld [vmem:[#allocation2] sm:$0xfc] }
 0x34b   :  { %1132 = vmatmul.bf16.vlgmr.msra.gmra.mxu2 %v873_v6  ;;  %v917_v20 = vsel %vm291_vm14, %v915_v58, %v916_v61  ;;  %v922_v23 = vsel %vm291_vm14, %v916_v61, %v921_v62  ;;  %v1179_v44 = vrot.slane %v2247_v59, 2  ;;  %v1178_v45 = vrot.slane %v1162_v41, 2  ;;  %v1168_v2 = vld [vmem:[#allocation2 + $0x50] sm:$0x3]  ;;  %v1717_v41 = vld [vmem:[%s2307_s0 + $0x8] sm:$0xff] }
 0x34c   :  { %1592 = vmatmul.msk.bf16.vlgmr.msra.gmra.mxu0 %vm397_vm15, %v874_v9  ;;  %v943_v11 = vpack.c.bf16 %v922_v23, %v917_v20  ;;  %v920_v12 = vsel %vm291_vm14, %v918_v60, %v919_v17  ;;  %v924_v26 = vsel %vm291_vm14, %v919_v17, %v923_v10  ;;  %v1183_v46 = vsel %vm556_vm1, %v1181_v40, %v1182_v37 }
 0x34d   :  { %v944_v7 = vpack.c.bf16 %v924_v26, %v920_v12  ;;  %v1187_v48 = vsel %vm556_vm1, %v1182_v37, %v1186_v42  ;;  %v1180_v51 = vsel %vm556_vm1, %v1178_v45, %v1179_v44  ;;  %v1185_v52 = vsel %vm556_vm1, %v1179_v44, %v1184_v49 }
 0x34e   :  { %1034 = vmatmul.bf16.vlgmr.msrb.gmra.mxu1 %v943_v11  ;;  %v899_v14 = vld [vmem:[#allocation2 + $0x30] sm:$0xfe]  ;;  %v1207_v50 = vpack.c.bf16 %v1187_v48, %v1183_v46  ;;  %v1206_v53 = vpack.c.bf16 %v1185_v52, %v1180_v51  ;;  %v1194_v60 = vrot.slane %v1168_v2, 2 }
 0x34f   :  { %1554 = vmatmul.msk.bf16.vlgmr.msrb.gmra.mxu3 %vm397_vm15, %v944_v7  ;;  %v900_v31 = vld [vmem:[#allocation2 + $0x38] sm:$0xfe]  ;;  %v925_v16 = vrot.slane %v899_v14, 1  ;;  %v869_v5 = vld [vmem:[#allocation2 + $0x30] sm:$0xff] }
 0x350   :  { %v871_v29 = vld [vmem:[#allocation2 + $0x40] sm:$0xff]  ;;  %v928_v35 = vrot.slane %v900_v31, 1  ;;  %v870_v22 = vld [vmem:[#allocation2 + $0x38] sm:$0xff]  ;;  %v1166_v1 = vld [vmem:[#allocation2 + $0x30] sm:$0xfc] }
 0x351   :  { %v872_v15 = vld [vmem:[#allocation2 + $0x48] sm:$0xff]  ;;  %v926_v8 = vrot.slane %v871_v29, 1  ;;  %v875_v25 = vpack.c.bf16 %v871_v29, %v869_v5  ;;  %v1167_v47 = vld [vmem:[#allocation2 + $0x38] sm:$0xfc]  ;;  %v1189_v57 = vrot.slane %v871_v29, 2  ;;  %v1188_v58 = vrot.slane %v1166_v1, 2 }
 0x352   :  { %v929_v19 = vrot.slane %v872_v15, 1  ;;  %v876_v39 = vpack.c.bf16 %v872_v15, %v870_v22  ;;  %v1192_v0 = vrot.slane %v872_v15, 2  ;;  %v1191_v55 = vrot.slane %v1167_v47, 2 }
 0x353   :  { %v927_v21 = vsel %vm291_vm14, %v925_v16, %v926_v8  ;;  %v932_v4 = vsel %vm291_vm14, %v926_v8, %v931_v24  ;;  %v1190_v61 = vsel %vm556_vm1, %v1188_v58, %v1189_v57  ;;  %v1195_v13 = vsel %vm556_vm1, %v1189_v57, %v1194_v60  ;;  %v1719_v57 = vld [vmem:[%s2307_s0 + $0x18] sm:$0xff] }
 0x354   :  { %v930_v27 = vsel %vm291_vm14, %v928_v35, %v929_v19  ;;  %v934_v28 = vsel %vm291_vm14, %v929_v19, %v933_v38  ;;  %v945_v30 = vpack.c.bf16 %v932_v4, %v927_v21  ;;  %v1193_v3 = vsel %vm556_vm1, %v1191_v55, %v1192_v0  ;;  %v1711_v19 = vld [vmem:[%s2315_s6] ss:$0 sm:$0xff] }
 0x355   :  { %v946_v32 = vpack.c.bf16 %v934_v28, %v930_v27  ;;  %v1197_v59 = vsel %vm556_vm1, %v1192_v0, %v1196_v56  ;;  %v1208_v62 = vpack.c.bf16 %v1195_v13, %v1190_v61  ;;  %v1716_v21 = vld [vmem:[%s2307_s0] sm:$0xff] }
 0x356   :  { %v1209_v6 = vpack.c.bf16 %v1197_v59, %v1193_v3 }
 0x35b   :  { %1137 = vmatmul.bf16.gmra.mxu2 %v875_v25 }
 0x35c   :  { %1593 = vmatmul.msk.bf16.gmra.mxu0 %vm397_vm15, %v876_v39 }
 0x35e   :  { %1039 = vmatmul.bf16.gmra.mxu1 %v945_v30 }
 0x35f   :  { %1555 = vmatmul.msk.bf16.gmra.mxu3 %vm397_vm15, %v946_v32 }
 0x36c   :  { %1648 = vmatmul.msk.bf16.vlgmr.msrb.gmra.mxu0 %vm397_vm15, %v1207_v50 }
 0x36f   :  { %1297 = vmatmul.bf16.vlgmr.msra.gmra.mxu3 %v1206_v53  ;;  %v1718_v53 = vld [vmem:[%s2307_s0 + $0x10] sm:$0xff] }
 0x37c   :  { %1649 = vmatmul.msk.bf16.gmra.mxu0 %vm397_vm15, %v1209_v6 }
 0x37f   :  { %1302 = vmatmul.bf16.gmra.mxu3 %v1208_v62 }
 0x3c9   :  { %v1152_v63 = vpop.f32.mrf.mxu0 }
 0x3cb   :  { %v1035_v12 = vpop.f32.mrf.mxu1 }
 0x3ce   :  { %v1133_v26 = vpop.f32.mrf.mxu2 }
 0x3d1   :  { %v1154_v9 = vpop.f32.mrf.mxu0 }
 0x3d2   :  { %v1054_v17 = vpop.f32.mrf.mxu3 }
 0x3d3   :  { %v1055_v29 = vadd.f32 %v1054_v17, %v1035_v12  ;;  %v1037_v15 = vpop.f32.mrf.mxu1 }
 0x3d5   :  { %v1134_v31 = vadd.f32 %v1133_v26, %v1055_v29 }
 0x3d6   :  { %v1135_v34 = vpop.f32.mrf.mxu2 }
 0x3d7   :  { %v1153_v18 = vadd.f32 %v1152_v63, %v1134_v31 }
 0x3d9   :  { %v1157_v10 = vpop.f32.mrf.mxu0 }
 0x3da   :  { %v1056_v20 = vpop.f32.mrf.mxu3 }
 0x3db   :  { %v1057_v16 = vadd.f32 %v1056_v20, %v1037_v15  ;;  %v1040_v25 = vpop.f32.mrf.mxu1 }
 0x3dd   :  { %v1136_v24 = vadd.f32 %v1135_v34, %v1057_v16 }
 0x3de   :  { %v1138_v32 = vpop.f32.mrf.mxu2 }
 0x3df   :  { %v1155_v28 = vadd.f32 %v1154_v9, %v1136_v24 }
 0x3e1   :  { %v1159_v23 = vpop.f32.mrf.mxu0 }
 0x3e2   :  { %v1059_v11 = vpop.f32.mrf.mxu3 }
 0x3e3   :  { %v1060_v27 = vadd.f32 %v1059_v11, %v1040_v25  ;;  %v1042_v43 = vpop.f32.mrf.mxu1 }
 0x3e5   :  { %v1139_v36 = vadd.f32 %v1138_v32, %v1060_v27 }
 0x3e6   :  { %v1140_v50 = vpop.f32.mrf.mxu2 }
 0x3e7   :  { %v1158_v46 = vadd.f32 %v1157_v10, %v1139_v36 }
 0x3e9   :  { %v1317_v14 = vpop.f32.mrf.mxu0 }
 0x3ea   :  { %v1061_v7 = vpop.f32.mrf.mxu3 }
 0x3eb   :  { %v1062_v45 = vadd.f32 %v1061_v7, %v1042_v43 }
 0x3ed   :  { %v1141_v51 = vadd.f32 %v1140_v50, %v1062_v45 }
 0x3ef   :  { %v1160_v55 = vadd.f32 %v1159_v23, %v1141_v51 }
 0x3f1   :  { %v1319_v22 = vpop.f32.mrf.mxu0 }
 0x3f2   :  { %v1298_v8 = vpop.f32.mrf.mxu3 }
 0x3f3   :  { %v1318_v5 = vadd.f32 %v1317_v14, %v1298_v8 }
 0x3f5   :  { %v1327_v35 = vadd.f32 %v1318_v5, %v1153_v18 }
 0x3f7   :  { %v1334_v38 = vadd.f32 %v1711_v19, %v1327_v35 }
 0x3f9   :  { %v1338_v4 = vadd.f32 %v1716_v21, %v1334_v38  ;;  %v1322_v40 = vpop.f32.mrf.mxu0 }
 0x3fa   :  { %v1300_v39 = vpop.f32.mrf.mxu3 }
 0x3fb   :  { %1342 = vst [vmem:[%s2316_s10] sm:$0xff] %v1338_v4  ;;  %v1320_v30 = vadd.f32 %v1319_v22, %v1300_v39 }
 0x3fd   :  { %v1328_v33 = vadd.f32 %v1320_v30, %v1155_v28 }
 0x3ff   :  { %v1335_v37 = vadd.f32 %v1711_v19, %v1328_v33 }
 0x401   :  { %v1339_v42 = vadd.f32 %v1717_v41, %v1335_v37  ;;  %v1324_v54 = vpop.f32.mrf.mxu0 }
 0x402   :  { %v1303_v44 = vpop.f32.mrf.mxu3 }
 0x403   :  { %1343 = vst [vmem:[%s2316_s10 + $0x8] sm:$0xff] %v1339_v42  ;;  %v1323_v48 = vadd.f32 %v1322_v40, %v1303_v44 }
 0x405   :  { %v1329_v49 = vadd.f32 %v1323_v48, %v1158_v46 }
 0x407   :  { %v1336_v52 = vadd.f32 %v1711_v19, %v1329_v49 }
 0x409   :  { %v1340_v47 = vadd.f32 %v1718_v53, %v1336_v52 }
 0x40a   :  { %v1305_v0 = vpop.f32.mrf.mxu3 }
 0x40b   :  { %1344 = vst [vmem:[%s2316_s10 + $0x10] sm:$0xff] %v1340_v47  ;;  %v1325_v1 = vadd.f32 %v1324_v54, %v1305_v0 }
 0x40d   :  { %v1330_v56 = vadd.f32 %v1325_v1, %v1160_v55 }
 0x40f   :  { %v1337_v2 = vadd.f32 %v1711_v19, %v1330_v56 }
 0x411   :  { %v1341_v58 = vadd.f32 %v1719_v57, %v1337_v2 }
 0x413   :  { %1345 = vst [vmem:[%s2316_s10 + $0x18] sm:$0xff] %v1341_v58 }

</bundles_post_ra>
